<compile_context>
chip_gen: v7x
topology: tpu7x:2x2x1
jax: 0.10.0
libtpu: 0.0.40
codegen_flags: <defaults>
</compile_context>

<pallas_src>
import jax
import jax.numpy as jnp
from jax.experimental import pallas as pl
from jax.experimental.pallas import tpu as pltpu

_LANES = 128      # vreg lane width
_SUBLANES = 8     # f32 sublane granularity


def _multi_input_kernel(w_ref, b_ref, x1_ref, x2_ref, o_ref):
    # w_ref: SMEM (2,)  -- Linear weight [w0, w1] (row of the (1, 2) matrix)
    # b_ref: SMEM (1,)  -- Linear bias
    # x1_ref, x2_ref, o_ref: VMEM (tile_rows, 128) lane-dense batch tiles
    w0 = w_ref[0]
    w1 = w_ref[1]
    b = b_ref[0]
    z = x1_ref[...] * w0 + x2_ref[...] * w1 + b   # == cat([x1, x2], 1) @ W.T + b

    # Exact, numerically-stable sigmoid:
    #   z >= 0: 1 / (1 + exp(-z))        z < 0: exp(z) / (1 + exp(z))
    ez = jnp.exp(-jnp.abs(z))                     # in (0, 1], never overflows
    denom = 1.0 + ez
    o_ref[...] = jnp.where(z >= 0, 1.0 / denom, ez / denom)


def _round_up(x, m):
    return ((x + m - 1) // m) * m


def multi_input_forward(x1, x2, weight, bias, *, tile_rows=4096,
                        input_buffer_count=2):
    """x1, x2: (N, 1); weight: (1, 2); bias: (1,) -> (N, 1) float32.

    tile_rows: rows of the lane-dense (rows, 128) layout per grid step.
      4096 (default) -> 12 MiB double-buffered, safe on every generation.
      8192 on v6e/v7x -> 24 MiB, still under their 32 MiB scoped default.
    input_buffer_count: set to 3 on v7x for deeper input pipelining (check
      VMEM budget: 3 buffers on inputs at tile_rows=4096 -> ~16 MiB).
    """
    n = x1.shape[0]
    assert x1.shape == (n, 1) and x2.shape == (n, 1)
    assert tile_rows % _SUBLANES == 0

    # Lane-dense layout: fold the batch into (rows, 128), rows multiple of 8.
    rows = _round_up(pl.cdiv(n, _LANES), _SUBLANES)
    total = rows * _LANES

    # Ensure >= 2 grid steps once rows > 8 so v7x can use both TensorCores;
    # clamp to tile_rows.  Grid handles a ragged last block (Pallas masks it).
    tr = min(tile_rows, max(_SUBLANES, _round_up(pl.cdiv(rows, 2), _SUBLANES)))
    grid = (pl.cdiv(rows, tr),)

    def to_lanes(x):
        flat = x.reshape(-1).astype(jnp.float32)
        pad = total - flat.shape[0]
        if pad:  # at most 8*128-1 elements; no tile-multiple padding anymore
            flat = jnp.pad(flat, (0, pad))
        return flat.reshape(rows, _LANES)

    x1_l = to_lanes(x1)
    x2_l = to_lanes(x2)
    w_flat = weight.reshape(2).astype(jnp.float32)
    b_flat = bias.reshape(1).astype(jnp.float32)

    def in_spec():
        if input_buffer_count != 2:
            return pl.BlockSpec((tr, _LANES), lambda i: (i, 0),
                                pipeline_mode=pl.Buffered(input_buffer_count))
        return pl.BlockSpec((tr, _LANES), lambda i: (i, 0))

    out_l = pl.pallas_call(
        _multi_input_kernel,
        out_shape=jax.ShapeDtypeStruct((rows, _LANES), jnp.float32),
        grid=grid,
        in_specs=[
            pl.BlockSpec(memory_space=pltpu.MemorySpace.SMEM),   # weight (2,)
            pl.BlockSpec(memory_space=pltpu.MemorySpace.SMEM),   # bias   (1,)
            in_spec(),                                           # x1 tile
            in_spec(),                                           # x2 tile
        ],
        out_specs=pl.BlockSpec((tr, _LANES), lambda i: (i, 0)),
        compiler_params=pltpu.CompilerParams(
            dimension_semantics=("parallel",),   # shards across TCs on v7x
        ),
    )(w_flat, b_flat, x1_l, x2_l)

    # Back to the module's (N, 1) output, dropping the small reshape padding.
    # (Callers that can consume the padded (rows, 128) slab directly may skip
    #  this slice; padded tail holds sigmoid(bias).)
    return out_l.reshape(total, 1)[:n]


if __name__ == "__main__":
    key = jax.random.PRNGKey(0)
    k_x1, k_x2, k_w, k_b = jax.random.split(key, 4)

    # Small batch; deliberately not a multiple of 128 to exercise padding.
    N = 200
    x1 = jax.random.normal(k_x1, (N, 1), dtype=jnp.float32)
    x2 = jax.random.normal(k_x2, (N, 1), dtype=jnp.float32)

    # Deterministic parameter init (matches nn.Linear(2, 1) shapes).
    weight = jax.random.uniform(k_w, (1, 2), dtype=jnp.float32,
                                minval=-0.5, maxval=0.5)
    bias = jax.random.uniform(k_b, (1,), dtype=jnp.float32,
                              minval=-0.5, maxval=0.5)

    out = multi_input_forward(x1, x2, weight, bias)
    out = jax.block_until_ready(out)

    # Pure-JAX reference of the PyTorch forward.
    ref = jax.nn.sigmoid(jnp.concatenate([x1, x2], axis=1) @ weight.T + bias)
    assert out.shape == (N, 1)
    assert jnp.allclose(out, ref, atol=1e-6, rtol=1e-6), \
        float(jnp.max(jnp.abs(out - ref)))

    print("KERNEL_OK")
</pallas_src>

<mosaic_0001>
module attributes {stable_mosaic.version = 11 : i64} {
  func.func @_multi_input_kernel(%arg0: i32, %arg1: memref<2xf32, #tpu.memory_space<smem>>, %arg2: memref<1xf32, #tpu.memory_space<smem>>, %arg3: memref<8x128xf32, #tpu.memory_space<vmem>>, %arg4: memref<8x128xf32, #tpu.memory_space<vmem>>, %arg5: memref<8x128xf32, #tpu.memory_space<vmem>>) attributes {dimension_semantics = [#tpu.dimension_semantics<parallel>], iteration_bounds = array<i64: 1>, scalar_prefetch = 0 : i64, scratch_operands = 0 : i64, tpu.core_type = #tpu.core_type<tc>, window_params = [{transform_indices = @transform_0, window_bounds = array<i64: 2>}, {transform_indices = @transform_1, window_bounds = array<i64: 1>}, {transform_indices = @transform_2, window_bounds = array<i64: 8, 128>}, {transform_indices = @transform_3, window_bounds = array<i64: 8, 128>}, {transform_indices = @transform_4, window_bounds = array<i64: 8, 128>}]} {
    %c0 = arith.constant 0 : index
    %0 = memref.load %arg1[%c0] : memref<2xf32, #tpu.memory_space<smem>>
    %c1 = arith.constant 1 : index
    %1 = memref.load %arg1[%c1] : memref<2xf32, #tpu.memory_space<smem>>
    %c0_0 = arith.constant 0 : index
    %2 = memref.load %arg2[%c0_0] : memref<1xf32, #tpu.memory_space<smem>>
    %c0_1 = arith.constant 0 : index
    %c0_2 = arith.constant 0 : index
    %3 = vector.load %arg3[%c0_1, %c0_2] : memref<8x128xf32, #tpu.memory_space<vmem>>, vector<8x128xf32>
    %4 = vector.broadcast %0 : f32 to vector<8x128xf32>
    %5 = arith.mulf %3, %4 : vector<8x128xf32>
    %c0_3 = arith.constant 0 : index
    %c0_4 = arith.constant 0 : index
    %6 = vector.load %arg4[%c0_3, %c0_4] : memref<8x128xf32, #tpu.memory_space<vmem>>, vector<8x128xf32>
    %7 = vector.broadcast %1 : f32 to vector<8x128xf32>
    %8 = arith.mulf %6, %7 : vector<8x128xf32>
    %9 = arith.addf %5, %8 : vector<8x128xf32>
    %10 = vector.broadcast %2 : f32 to vector<8x128xf32>
    %11 = arith.addf %9, %10 : vector<8x128xf32>
    %12 = math.absf %11 : vector<8x128xf32>
    %cst = arith.constant 0.000000e+00 : f32
    %13 = vector.broadcast %cst : f32 to vector<8x128xf32>
    %14 = arith.subf %13, %12 : vector<8x128xf32>
    %15 = math.exp %14 : vector<8x128xf32>
    %cst_5 = arith.constant 1.000000e+00 : f32
    %16 = vector.broadcast %cst_5 : f32 to vector<8x128xf32>
    %17 = arith.addf %16, %15 : vector<8x128xf32>
    %cst_6 = arith.constant 0.000000e+00 : f32
    %18 = vector.broadcast %cst_6 : f32 to vector<8x128xf32>
    %19 = arith.cmpf oge, %11, %18 : vector<8x128xf32>
    %cst_7 = arith.constant 1.000000e+00 : f32
    %20 = vector.broadcast %cst_7 : f32 to vector<8x128xf32>
    %21 = arith.divf %20, %17 : vector<8x128xf32>
    %22 = arith.divf %15, %17 : vector<8x128xf32>
    %23 = arith.select %19, %21, %22 : vector<8x128xi1>, vector<8x128xf32>
    %c0_8 = arith.constant 0 : index
    %c0_9 = arith.constant 0 : index
    %24 = vector.load %arg5[%c0_8, %c0_9] : memref<8x128xf32, #tpu.memory_space<vmem>>, vector<8x128xf32>
    tpu.vector_store %arg5[%c0_8, %c0_9], %23 {strides = array<i32>} : memref<8x128xf32, #tpu.memory_space<vmem>>, vector<8x128xf32>,
    return
  }
  func.func @transform_0(%arg0: i32) -> i32 {
    %c0_i32 = arith.constant 0 : i32
    %c0_i32_0 = arith.constant 0 : i32
    return %c0_i32 : i32
  }
  func.func @transform_1(%arg0: i32) -> i32 {
    %c0_i32 = arith.constant 0 : i32
    %c0_i32_0 = arith.constant 0 : i32
    return %c0_i32 : i32
  }
  func.func @transform_2(%arg0: i32) -> (i32, i32) {
    %c0_i32 = arith.constant 0 : i32
    %c0_i32_0 = arith.constant 0 : i32
    return %arg0, %c0_i32 : i32, i32
  }
  func.func @transform_3(%arg0: i32) -> (i32, i32) {
    %c0_i32 = arith.constant 0 : i32
    %c0_i32_0 = arith.constant 0 : i32
    return %arg0, %c0_i32 : i32, i32
  }
  func.func @transform_4(%arg0: i32) -> (i32, i32) {
    %c0_i32 = arith.constant 0 : i32
    %c0_i32_0 = arith.constant 0 : i32
    return %arg0, %c0_i32 : i32, i32
  }
}

</mosaic_0001>

<bundles_post_ra>
// kernel: tpu_custom_call.1
= control target key start
LH: loop header
LB: loop body
LE: loop exit
PB: predicated region body
PF: predicated region fallthrough
CT: control target
= control target key end

     0   :  { %10 = vsyncpa [#allocation6], 0  ;;  %s214_s0 = inlined_call_operand.vmem [shape: f32[2], index: 0, kind: input, shape index: {}]   ;;  %s215_s1 = inlined_call_operand.<no memory space> [shape: f32[1], index: 1, kind: input, shape index: {}]   ;;  %s216_s2 = inlined_call_operand.hbm [shape: f32[8,128], index: 2, kind: input, shape index: {}]   ;;  %s217_s3 = inlined_call_operand.vmem [shape: f32[8,128], index: 3, kind: input, shape index: {}]   ;;  %s218_s4 = inlined_call_operand.hbm [shape: f32[8,128], index: 4, kind: output, shape index: {}]  }
   0x1   :  { %11 = vsyncpa [#allocation4], 0 }
   0x2   :  { %12 = vsyncpa [#allocation5], 0  ;;  %s19_s17 = sshll.u32 %s214_s0, 4  ;;  %s20_s17 = int_to_ptr.vmem [resolvable:$true] %s19_s17 }
   0x3   :  { %s91_s18 = scalar_lea.vmem %s20_s17, 16  ;;  %p96_p1 = scmp.lt.s32.totalorder %s20_s17, %s20_s17 }
   0x4   :  { %p92_p0 = scmp.ne.s32.totalorder %s20_s17, %s91_s18  ;;  %p97_p2 = scmp.lt.s32.totalorder %s91_s18, %s91_s18 }
   0x6   :  { %p98_p3 = por %p97_p2, %p96_p1 }
   0x8   :  { %p99_p4 = pnand %p98_p3, %p92_p0 }
   0xa   :  { %102 = shalt.err (!%p99_p4)
}
   0xb   :  { %s153_s19 = smov [#allocation3]   ;;  %s154_s20 = smov [#allocation7]  }
   0xc   :  { %22 = dma.vmem_to_smem %s20_s17, 16, %s153_s19, [#allocation6]  }
   0xd   :  { %s31_s21 = sshll.u32 %s154_s20, 4  ;;  %s103_s24 = scalar_lea.hbm %s216_s2, 128  ;;  %s32_s21 = int_to_ptr.vmem [resolvable:$true] %s31_s21 }
   0xe   :  { %p104_p5 = scmp.ne.s32.totalorder %s216_s2, %s103_s24  ;;  %p107_p6 = scmp.lt.u32.totalorder %s103_s24, %s216_s2 }
  0x10   :  { %p109_p7 = pnand %p107_p6, %p104_p5 }
  0x12   :  { %112 = shalt.err (!%p109_p7)
}
  0x13   :  { %s113_s28 = scalar_lea.vmem %s32_s21, 128  ;;  %p118_p9 = scmp.lt.s32.totalorder %s32_s21, %s32_s21 }
  0x14   :  { %p114_p8 = scmp.ne.s32.totalorder %s32_s21, %s113_s28  ;;  %p119_p10 = scmp.lt.s32.totalorder %s113_s28, %s113_s28 }
  0x16   :  { %p120_p11 = por %p119_p10, %p118_p9 }
  0x18   :  { %p121_p12 = pnand %p120_p11, %p114_p8 }
  0x1a   :  { %124 = shalt.err (!%p121_p12)
}
  0x1b   :  { %34 = dma.hbm_to_vmem [thread:$0]  %s216_s2, 128, %s32_s21, [#allocation4]  }
  0x1c   :  { %147 = dma.done.wait [#allocation6], 16  }
  0x1d   :  { %148 = vsyncadd [#allocation6], 4294967280 }
  0x1e   :  { %149 = dma.done.wait [#allocation4], 128  }
  0x1f   :  { %150 = vsyncadd [#allocation4], 4294967168 }
  0x20   :  { %43 = sfence }
  0x21   :  { %s44_s5 = sld [smem:[#allocation3]]  ;;  %s83_s6 = sld [smem:[#allocation3 + $0x1]]  ;;  %v47_v0 = vld [vmem:[#allocation7] sm:$0xff]  ;;  %v54_v6 = vstv %s215_s1 }
  0x22   :  { %v50_v1 = vld [vmem:[%s217_s3] sm:$0xff]  ;;  %s155_s2 = smov [#allocation8]  }
  0x23   :  { %s73_s11 = sshll.u32 %s155_s2, 4  ;;  %s74_s11 = int_to_ptr.vmem [resolvable:$true] %s73_s11 }
  0x24   :  { %s125_s3 = scalar_lea.vmem %s74_s11, 128  ;;  %p130_p0 = scmp.lt.s32.totalorder %s74_s11, %s74_s11 }
  0x25   :  { %p126_p13 = scmp.ne.s32.totalorder %s74_s11, %s125_s3  ;;  %p131_p1 = scmp.lt.s32.totalorder %s125_s3, %s125_s3 }
  0x27   :  { %v48_v2 = vstv %s44_s5  ;;  %v51_v3 = vstv %s83_s6  ;;  %p132_p2 = por %p131_p1, %p130_p0 }
  0x28   :  { %v49_v4 = vmul.f32 %v48_v2, %v47_v0  ;;  %v52_v5 = vmul.f32 %v51_v3, %v50_v1 }
  0x29   :  { %p133_p3 = pnand %p132_p2, %p126_p13 }
  0x2a   :  { %v53_v7 = vadd.f32 %v52_v5, %v49_v4 }
  0x2c   :  { %v55_v8 = vadd.f32 %v54_v6, %v53_v7 }
  0x2e   :  { %v56_v9 = vand.u32 2147483647, %v55_v8  ;;  %vm61_vm0 = vcmp.ge.f32.partialorder %v55_v8, 0.0 }
  0x30   :  { %v57_v10 = vsub.f32 0.0, %v56_v9 }
  0x32   :  { %v58_v11 = vmul.f32 1.442695, %v57_v10 }
  0x34   :  { %87 = vpow2.f32 %v58_v11 }
  0x3e   :  { %v88_v12 = vpop.eup %87 }
  0x3f   :  { %v60_v13 = vadd.f32 1.0, %v88_v12 }
  0x41   :  { %89 = vrcp.f32 %v60_v13 }
  0x4b   :  { %v90_v14 = vpop.eup %89 }
  0x4c   :  { %v64_v15 = vmul.f32 %v90_v14, %v88_v12 }
  0x4e   :  { %v65_v16 = vsel %vm61_vm0, %v90_v14, %v64_v15 }
  0x4f   :  { %66 = vst [vmem:[#allocation8] sm:$0xff] %v65_v16 }
  0x50   :  { %136 = shalt.err (!%p133_p3)
}
  0x51   :  { %s137_s13 = scalar_lea.hbm %s218_s4, 128 }
  0x52   :  { %p138_p4 = scmp.ne.s32.totalorder %s218_s4, %s137_s13  ;;  %p141_p5 = scmp.lt.u32.totalorder %s137_s13, %s218_s4 }
  0x54   :  { %p143_p6 = pnand %p141_p5, %p138_p4 }
  0x56   :  { %146 = shalt.err (!%p143_p6)
}
  0x57   :  { %76 = dma.vmem_to_hbm [thread:$0]  %s74_s11, 128, %s218_s4, [#allocation5]  }
  0x58   :  { %151 = dma.done.wait [#allocation5], 128  }
  0x59   :  { %152 = vsyncadd [#allocation5], 4294967168 }
  0x5a   :  { %80 = vsyncpa [#allocation4], 1 }
  0x5b   :  { %81 = vsyncpa [#allocation5], 1 }
  0x5c   :  { %82 = vsyncpa [#allocation6], 1 }

</bundles_post_ra>
